<compile_context>
chip_gen: v5e
topology: v5e:2x2
jax: 0.10.0
libtpu: 0.0.40
codegen_flags: <defaults>
</compile_context>

<pallas_src>
import jax
import jax.numpy as jnp
from jax.experimental import pallas as pl
from jax.experimental.pallas import tpu as pltpu


def _skipgram_kernel(emb_ref, wt_ref, b_ref, out_ref, x_scratch):
    # emb_ref   : (TN, E)  f32   gathered embedding rows for this token tile
    # wt_ref    : (E, TV)  bf16/f32  pre-transposed linear weight slice
    # b_ref     : (1, TV)  f32   bias slice
    # out_ref   : (TN, TV) f32   logits tile
    # x_scratch : (TN, E)  wt.dtype  renormalized embeddings (persist across vocab tiles)

    # PyTorch nn.Embedding(max_norm=1): rows with L2 norm > 1 are scaled by
    # max_norm / (norm + 1e-7).  Computed once per token tile (vocab axis is the
    # innermost grid axis), not once per (token, vocab) tile.
    @pl.when(pl.program_id(1) == 0)
    def _():
        emb = emb_ref[...].astype(jnp.float32)
        norm = jnp.sqrt(jnp.sum(emb * emb, axis=-1, keepdims=True))
        inv = pl.reciprocal(norm + 1e-7, approx=True)          # EUP slot, ~free
        scale = jnp.where(norm > 1.0, inv, 1.0)
        x_scratch[...] = (emb * scale).astype(x_scratch.dtype)

    # Pure MXU step: (TN, E) @ (E, TV) with f32 accumulation, then bias.
    out = jnp.dot(x_scratch[...], wt_ref[...], preferred_element_type=jnp.float32)
    out_ref[...] = (out + b_ref[...]).astype(out_ref.dtype)


def prepare_skipgram_params(weight, bias, *, weight_dtype=jnp.bfloat16):
    """Hoisted out of the per-call path: transpose once to the MXU-friendly
    (K=E, N=V) layout and cast the weight to bf16 to halve HBM weight traffic
    (the dominant stream on bandwidth-poor v5e/v6e)."""
    wt = jnp.asarray(weight, weight_dtype).T            # (E, V)
    b2 = jnp.asarray(bias, jnp.float32).reshape(1, -1)  # (1, V)
    return wt, b2


def skipgram_forward(ids, emb_table, wt, b2, *, tn=256, tv=512):
    """ids: (B, S) int32; wt: (E, V) pre-transposed weight; b2: (1, V) bias.
    Returns logits (B, S, V) float32."""
    B, S = ids.shape
    E, V = wt.shape
    N = B * S

    # Tile sizes: lane-dense output (tv multiple of 128), tn capped at the token count.
    tn = min(tn, N)
    tv = min(tv, V)

    # Glue: embedding gather (data-dependent row fetch). Kept outside the kernel;
    # for very large N an in-kernel scalar-prefetch gather would remove this HBM
    # round trip, but it is not worth the complexity at these sizes.
    emb = jnp.take(emb_table, ids.reshape(-1), axis=0).astype(jnp.float32)   # (N, E)

    grid = (pl.cdiv(N, tn), pl.cdiv(V, tv))

    out = pl.pallas_call(
        _skipgram_kernel,
        out_shape=jax.ShapeDtypeStruct((N, V), jnp.float32),
        grid=grid,
        in_specs=[
            pl.BlockSpec((tn, E), lambda i, j: (i, 0)),   # gathered embeddings
            pl.BlockSpec((E, tv), lambda i, j: (0, j)),   # W^T slice
            pl.BlockSpec((1, tv), lambda i, j: (0, j)),   # bias slice
        ],
        out_specs=pl.BlockSpec((tn, tv), lambda i, j: (i, j)),
        scratch_shapes=[pltpu.VMEM((tn, E), wt.dtype)],   # renormalized token tile
        compiler_params=pltpu.CompilerParams(
            # Vocab axis must be sequential (scratch computed at j==0, reused for all j).
            # Token axis stays parallel so v7x's two TensorCores both get work.
            dimension_semantics=("parallel", "arbitrary"),
            # Explicit cap keeps double-buffering intact on v7x (64 MiB physical VMEM).
            vmem_limit_bytes=32 * 1024 * 1024,
        ),
    )(emb, wt, b2)

    return out.reshape(B, S, V)


if __name__ == "__main__":
    # Small, deterministic configuration.
    vocab_size = 512
    embedding_size = 32
    B, S = 2, 8

    key = jax.random.PRNGKey(0)
    k_emb, k_w, k_b, k_ids = jax.random.split(key, 4)

    # Deterministic synthetic parameters (shapes from SkipGramModel.__init__).
    emb_table = jax.random.normal(k_emb, (vocab_size, embedding_size), jnp.float32)
    weight = jax.random.normal(k_w, (vocab_size, embedding_size), jnp.float32) * 0.05
    bias = jax.random.normal(k_b, (vocab_size,), jnp.float32) * 0.05

    ids = jax.random.randint(k_ids, (B, S), 0, vocab_size, dtype=jnp.int32)

    # Weight transpose / cast and bias reshape done once, outside the hot call path.
    wt, b2 = prepare_skipgram_params(weight, bias)

    fwd = jax.jit(skipgram_forward)
    logits = fwd(ids, emb_table, wt, b2)
    jax.block_until_ready(logits)

    # Sanity check vs. a pure-f32 JAX reference of the same math.
    # Looser tolerance accounts for bf16-streamed weights + EUP approx reciprocal.
    e = jnp.take(emb_table, ids.reshape(-1), axis=0)
    n = jnp.linalg.norm(e, axis=-1, keepdims=True)
    e = e * jnp.where(n > 1.0, 1.0 / (n + 1e-7), 1.0)
    ref = (e @ weight.T + bias).reshape(B, S, vocab_size)
    assert logits.shape == (B, S, vocab_size)
    assert jnp.allclose(logits, ref, atol=1e-2, rtol=1e-2), float(
        jnp.max(jnp.abs(logits - ref))
    )

    print("KERNEL_OK")
</pallas_src>

<mosaic_0001>
module attributes {stable_mosaic.version = 11 : i64} {
  func.func @_skipgram_kernel(%arg0: i32, %arg1: i32, %arg2: memref<16x32xf32, #tpu.memory_space<vmem>>, %arg3: memref<32x512xbf16, #tpu.memory_space<vmem>>, %arg4: memref<1x512xf32, #tpu.memory_space<vmem>>, %arg5: memref<16x512xf32, #tpu.memory_space<vmem>>, %arg6: memref<16x32xbf16, #tpu.memory_space<vmem>>) attributes {dimension_semantics = [#tpu.dimension_semantics<parallel>, #tpu.dimension_semantics<arbitrary>], iteration_bounds = array<i64: 1, 1>, scalar_prefetch = 0 : i64, scratch_operands = 1 : i64, tpu.core_type = #tpu.core_type<tc>, window_params = [{transform_indices = @transform_0, window_bounds = array<i64: 16, 32>}, {transform_indices = @transform_1, window_bounds = array<i64: 32, 512>}, {transform_indices = @transform_2, window_bounds = array<i64: 1, 512>}, {transform_indices = @transform_3, window_bounds = array<i64: 16, 512>}]} {
    %c0_i32 = arith.constant 0 : i32
    %0 = arith.cmpi eq, %arg1, %c0_i32 : i32
    %1 = arith.extui %0 : i1 to i32
    %c0_i32_0 = arith.constant 0 : i32
    %2 = arith.cmpi ne, %1, %c0_i32_0 : i32
    scf.if %2 {
      %c0_8 = arith.constant 0 : index
      %c0_9 = arith.constant 0 : index
      %10 = vector.load %arg2[%c0_8, %c0_9] : memref<16x32xf32, #tpu.memory_space<vmem>>, vector<16x32xf32>
      %11 = arith.mulf %10, %10 : vector<16x32xf32>
      %cst_10 = arith.constant dense<0.000000e+00> : vector<16xf32>
      %12 = vector.multi_reduction <add>, %11, %cst_10 [1] : vector<16x32xf32> to vector<16xf32>
      %13 = vector.shape_cast %12 : vector<16xf32> to vector<16x1xf32>
      %14 = math.sqrt %13 : vector<16x1xf32>
      %cst_11 = arith.constant 1.000000e-07 : f32
      %15 = vector.broadcast %cst_11 : f32 to vector<16x1xf32>
      %16 = arith.addf %14, %15 : vector<16x1xf32>
      %17 = tpu.reciprocal %16 {approx = true} : vector<16x1xf32> -> vector<16x1xf32>
      %cst_12 = arith.constant 1.000000e+00 : f32
      %18 = vector.broadcast %cst_12 : f32 to vector<16x1xf32>
      %19 = arith.cmpf ogt, %14, %18 : vector<16x1xf32>
      %cst_13 = arith.constant 1.000000e+00 : f32
      %20 = vector.broadcast %cst_13 : f32 to vector<16x1xf32>
      %21 = arith.select %19, %17, %20 : vector<16x1xi1>, vector<16x1xf32>
      %22 = vector.broadcast %21 : vector<16x1xf32> to vector<16x32xf32>
      %23 = arith.mulf %10, %22 : vector<16x32xf32>
      %24 = arith.truncf %23 : vector<16x32xf32> to vector<16x32xbf16>
      %c0_14 = arith.constant 0 : index
      %c0_15 = arith.constant 0 : index
      %25 = vector.load %arg6[%c0_14, %c0_15] : memref<16x32xbf16, #tpu.memory_space<vmem>>, vector<16x32xbf16>
      tpu.vector_store %arg6[%c0_14, %c0_15], %24 {strides = array<i32>} : memref<16x32xbf16, #tpu.memory_space<vmem>>, vector<16x32xbf16>,
    } else {
    }
    %c0 = arith.constant 0 : index
    %c0_1 = arith.constant 0 : index
    %3 = vector.load %arg6[%c0, %c0_1] : memref<16x32xbf16, #tpu.memory_space<vmem>>, vector<16x32xbf16>
    %c0_2 = arith.constant 0 : index
    %c0_3 = arith.constant 0 : index
    %4 = vector.load %arg3[%c0_2, %c0_3] : memref<32x512xbf16, #tpu.memory_space<vmem>>, vector<32x512xbf16>
    %cst = arith.constant dense<0.000000e+00> : vector<16x512xf32>
    %5 = tpu.matmul %3, %4, %cst {dimension_numbers = #tpu.dot_dimension_numbers<[1], [0], [0], [1], [0, 0, 1, 1], [], []>} : vector<16x32xbf16>, vector<32x512xbf16>, vector<16x512xf32> -> vector<16x512xf32>
    %c0_4 = arith.constant 0 : index
    %c0_5 = arith.constant 0 : index
    %6 = vector.load %arg4[%c0_4, %c0_5] : memref<1x512xf32, #tpu.memory_space<vmem>>, vector<1x512xf32>
    %7 = vector.broadcast %6 : vector<1x512xf32> to vector<16x512xf32>
    %8 = arith.addf %5, %7 : vector<16x512xf32>
    %c0_6 = arith.constant 0 : index
    %c0_7 = arith.constant 0 : index
    %9 = vector.load %arg5[%c0_6, %c0_7] : memref<16x512xf32, #tpu.memory_space<vmem>>, vector<16x512xf32>
    tpu.vector_store %arg5[%c0_6, %c0_7], %8 {strides = array<i32>} : memref<16x512xf32, #tpu.memory_space<vmem>>, vector<16x512xf32>,
    return
  }
  func.func @transform_0(%arg0: i32, %arg1: i32) -> (i32, i32) {
    %c0_i32 = arith.constant 0 : i32
    %c0_i32_0 = arith.constant 0 : i32
    return %arg0, %c0_i32 : i32, i32
  }
  func.func @transform_1(%arg0: i32, %arg1: i32) -> (i32, i32) {
    %c0_i32 = arith.constant 0 : i32
    %c0_i32_0 = arith.constant 0 : i32
    return %c0_i32, %arg1 : i32, i32
  }
  func.func @transform_2(%arg0: i32, %arg1: i32) -> (i32, i32) {
    %c0_i32 = arith.constant 0 : i32
    %c0_i32_0 = arith.constant 0 : i32
    return %c0_i32, %arg1 : i32, i32
  }
  func.func @transform_3(%arg0: i32, %arg1: i32) -> (i32, i32) {
    %c0_i32 = arith.constant 0 : i32
    return %arg0, %arg1 : i32, i32
  }
}

</mosaic_0001>

<bundles_post_ra>
// kernel: skipgram_forward.1
= control target key start
LH: loop header
LB: loop body
LE: loop exit
PB: predicated region body
PF: predicated region fallthrough
CT: control target
= control target key end

     0   :  { %vm24_vm0 = vcmask 261120   ;;  %s406_s0 = inlined_call_operand.vmem [shape: f32[16,32], index: 0, kind: input, shape index: {}]   ;;  %s407_s1 = inlined_call_operand.vmem [shape: bf16[32,512], index: 1, kind: input, shape index: {}]   ;;  %s408_s2 = inlined_call_operand.vmem [shape: f32[1,512], index: 2, kind: input, shape index: {}]   ;;  %s409_s3 = inlined_call_operand.hbm [shape: f32[16,512], index: 3, kind: output, shape index: {}]  }
   0x1   :  { %v333_v0 = vld [vmem:[%s406_s0] sm:$0xff] }
   0x2   :  { %8 = vsyncpa [#allocation4], 0  ;;  %v22_v1 = vmul.f32 %v333_v0, %v333_v0  ;;  %v340_v2 = vld [vmem:[%s406_s0 + $0x8] sm:$0xff]  ;;  %v243_v11 = vld [vmem:[%s407_s1 + $0x20] sm:$0xf]  ;;  %vm67_vm6 = vcmask 257024  }
   0x3   :  { %v23_v4 = vmul.f32 %v340_v2, %v340_v2  ;;  %v268_v12 = vld [vmem:[%s407_s1 + $0x2c] sm:$0xf0]  ;;  %v266_v13 = vld [vmem:[%s407_s1 + $0x24] sm:$0xf]  ;;  %v245_v16 = vld [vmem:[%s407_s1 + $0x30] sm:$0xf0] }
   0x4   :  { %v25_v3 = vsel %vm24_vm0, %v22_v1, 0.0  ;;  %v244_v15 = vor.u32 %v268_v12, %v243_v11  ;;  %v251_v17 = vld [vmem:[%s407_s1 + $0x28] sm:$0xf]  ;;  %v248_v18 = vor.u32 %v266_v13, %v245_v16  ;;  %v269_v19 = vld [vmem:[%s407_s1 + $0x34] sm:$0xf0]  ;;  %s209_s23 = sshll.u32 %s409_s3, 4  ;;  %s210_s23 = int_to_ptr.hbm [resolvable:$true] %s209_s23 }
   0x5   :  { %26 = vadd.xlane.f32.xlu0 %v25_v3  ;;  %v28_v5 = vsel %vm24_vm0, %v23_v4, 0.0  ;;  %v267_v20 = vld [vmem:[%s407_s1 + $0x2c] sm:$0xf]  ;;  %v253_v21 = vld [vmem:[%s407_s1 + $0x38] sm:$0xf0]  ;;  %v252_v23 = vor.u32 %v269_v19, %v251_v17  ;;  %s308_s24 = smov 512  }
   0x6   :  { %145 = vmatpush.bf16.msra.mxu0 %v244_v15  ;;  %v256_v24 = vor.u32 %v267_v20, %v253_v21  ;;  %v227_v25 = vld [vmem:[%s407_s1] sm:$0xf]  ;;  %v264_v26 = vld [vmem:[%s407_s1 + $0xc] sm:$0xf0]  ;;  %159 = vmatpush.bf16.msra.mxu1 %v248_v18  ;;  %v262_v29 = vld [vmem:[%s407_s1 + $0x4] sm:$0xf] }
   0x7   :  { %v228_v28 = vor.u32 %v264_v26, %v227_v25  ;;  %v229_v30 = vld [vmem:[%s407_s1 + $0x10] sm:$0xf0]  ;;  %v235_v31 = vld [vmem:[%s407_s1 + $0x8] sm:$0xf]  ;;  %173 = vmatpush.bf16.msra.mxu2 %v252_v23  ;;  %v265_v35 = vld [vmem:[%s407_s1 + $0x14] sm:$0xf0] }
   0x8   :  { %187 = vmatpush.bf16.msra.mxu3 %v256_v24  ;;  %v232_v34 = vor.u32 %v262_v29, %v229_v30  ;;  %v263_v36 = vld [vmem:[%s407_s1 + $0xc] sm:$0xf]  ;;  %v237_v37 = vld [vmem:[%s407_s1 + $0x18] sm:$0xf0]  ;;  %v236_v38 = vor.u32 %v265_v35, %v235_v31  ;;  %v80_v63 = vld [vmem:[%s408_s2] sm:$0xf] }
   0x9   :  { %v240_v39 = vor.u32 %v263_v36, %v237_v37  ;;  %v83_v1 = vperm.slane %v80_v63, 1  ;;  %s307_s2 = smov [#allocation3]   ;;  %s309_s25 = smov 32  }
   0xa   :  { %146 = vmatpush.bf16.msra.mxu0 %v228_v28  ;;  %160 = vmatpush.bf16.msra.mxu1 %v232_v34  ;;  %s207_s20 = sshll.u32 %s307_s2, 4  ;;  %s208_s20 = int_to_ptr.vmem [resolvable:$true] %s207_s20 }
   0xb   :  { %174 = vmatpush.bf16.msra.mxu2 %v236_v38 }
   0xc   :  { %188 = vmatpush.bf16.msra.mxu3 %v240_v39 }
   0xd   :  { %29 = vadd.xlane.f32.xlu0 %v28_v5 }
  0x78   :  { %v27_v6 = vpop.xlane.xlu0 %26 }
  0x79   :  { %273 = vrsqrt.f32 %v27_v6  ;;  %vm38_vm1 = vcmp.eq.f32.partialorder %v27_v6, inf  ;;  %v41_v42 = vand.u32 2147483648, %v27_v6  ;;  %vm40_vm2 = vcmp.eq.f32.partialorder %v27_v6, 0.0 }
  0x7f   :  { %v274_v7 = vpop.eup %273 }
  0x80   :  { %v32_v8 = vmul.f32 %v274_v7, %v27_v6  ;;  %v30_v9 = vpop.xlane.xlu0 %29 }
  0x81   :  { %275 = vrsqrt.f32 %v30_v9  ;;  %vm50_vm3 = vcmp.eq.f32.partialorder %v30_v9, inf  ;;  %v53_v50 = vand.u32 2147483648, %v30_v9  ;;  %vm52_vm4 = vcmp.eq.f32.partialorder %v30_v9, 0.0 }
  0x82   :  { %v33_v10 = vmul.f32 %v274_v7, %v32_v8 }
  0x84   :  { %v34_v14 = vmul.f32 0.5, %v33_v10 }
  0x86   :  { %v35_v22 = vsub.f32 1.5, %v34_v14 }
  0x87   :  { %v276_v27 = vpop.eup %275 }
  0x88   :  { %v36_v32 = vmul.f32 %v274_v7, %v35_v22  ;;  %v44_v33 = vmul.f32 %v276_v27, %v30_v9  ;;  %v85_v7 = vperm.slane %v80_v63, 3 }
  0x8a   :  { %v37_v40 = vmul.f32 %v36_v32, %v27_v6  ;;  %v45_v41 = vmul.f32 %v276_v27, %v44_v33 }
  0x8c   :  { %v39_v43 = vsel %vm38_vm1, %v27_v6, %v37_v40  ;;  %v46_v44 = vmul.f32 0.5, %v45_v41  ;;  %v84_v6 = vperm.slane %v80_v63, 2 }
  0x8d   :  { %v42_v45 = vsel %vm40_vm2, %v41_v42, %v39_v43 }
  0x8e   :  { %v55_v46 = vadd.f32 1e-07, %v42_v45  ;;  %v47_v47 = vsub.f32 1.5, %v46_v44  ;;  %vm59_vm5 = vcmp.gt.f32.partialorder %v42_v45, 1.0 }
  0x90   :  { %277 = vrcp.f32 %v55_v46  ;;  %v48_v48 = vmul.f32 %v276_v27, %v47_v47 }
  0x92   :  { %v49_v49 = vmul.f32 %v48_v48, %v30_v9 }
  0x94   :  { %v51_v51 = vsel %vm50_vm3, %v30_v9, %v49_v49 }
  0x95   :  { %v54_v52 = vsel %vm52_vm4, %v53_v50, %v51_v51 }
  0x96   :  { %v278_v53 = vpop.eup %277  ;;  %v56_v54 = vadd.f32 1e-07, %v54_v52  ;;  %vm60_vm7 = vcmp.gt.f32.partialorder %v54_v52, 1.0 }
  0x97   :  { %v61_v55 = vsel %vm59_vm5, %v278_v53, 1.0 }
  0x98   :  { %v63_v56 = vmul.f32 %v61_v55, %v333_v0  ;;  %279 = vrcp.f32 %v56_v54  ;;  %v82_v0 = vperm.slane %v80_v63, 0 }
  0x9a   :  { %v65_v57 = vpack.c.bf16 %v63_v56, %v63_v56 }
  0x9c   :  { %68 = vst.msk [vmem:[#allocation2] sm:$0xf] %vm67_vm6, %v65_v57 }
  0x9e   :  { %v280_v58 = vpop.eup %279 }
  0x9f   :  { %v62_v59 = vsel %vm60_vm7, %v280_v58, 1.0 }
  0xa0   :  { %v64_v60 = vmul.f32 %v62_v59, %v340_v2 }
  0xa2   :  { %v66_v61 = vpack.c.bf16 %v64_v60, %v64_v60 }
  0xa4   :  { %69 = vst.msk [vmem:[#allocation2 + $0x4] sm:$0xf] %vm67_vm6, %v66_v61 }
  0xab   :  { %v261_v62 = vld [vmem:[#allocation2] sm:$0xff] }
  0xac   :  { %257 = vmatmul.msk.bf16.vlgmr.msra.gmra.mxu0 %vm24_vm0, %v261_v62  ;;  %258 = vmatmul.msk.bf16.vlgmr.msra.gmra.mxu1 %vm24_vm0, %v261_v62 }
  0xad   :  { %259 = vmatmul.msk.bf16.vlgmr.msra.gmra.mxu2 %vm24_vm0, %v261_v62  ;;  %260 = vmatmul.msk.bf16.vlgmr.msra.gmra.mxu3 %vm24_vm0, %v261_v62 }
 0x129   :  { %v148_v3 = vpop.f32.mrf.mxu0  ;;  %v162_v4 = vpop.f32.mrf.mxu1 }
 0x12a   :  { %v149_v2 = vadd.f32 %v148_v3, %v82_v0  ;;  %v163_v5 = vadd.f32 %v162_v4, %v83_v1 }
 0x12c   :  { %195 = vst [vmem:[#allocation3] sm:$0xff] %v149_v2 }
 0x12d   :  { %196 = vst [vmem:[#allocation3 + $0x8] sm:$0xff] %v163_v5 }
 0x130   :  { %v176_v8 = vpop.f32.mrf.mxu2  ;;  %v190_v9 = vpop.f32.mrf.mxu3 }
 0x131   :  { %v177_v10 = vadd.f32 %v176_v8, %v84_v6  ;;  %v191_v11 = vadd.f32 %v190_v9, %v85_v7  ;;  %v150_v12 = vpop.f32.mrf.mxu0  ;;  %v164_v13 = vpop.f32.mrf.mxu1 }
 0x132   :  { %v151_v14 = vadd.f32 %v150_v12, %v82_v0  ;;  %v165_v15 = vadd.f32 %v164_v13, %v83_v1 }
 0x133   :  { %197 = vst [vmem:[#allocation3 + $0x10] sm:$0xff] %v177_v10 }
 0x134   :  { %198 = vst [vmem:[#allocation3 + $0x18] sm:$0xff] %v191_v11 }
 0x135   :  { %199 = vst [vmem:[#allocation3 + $0x20] sm:$0xff] %v151_v14 }
 0x136   :  { %200 = vst [vmem:[#allocation3 + $0x28] sm:$0xff] %v165_v15 }
 0x138   :  { %v178_v16 = vpop.f32.mrf.mxu2  ;;  %v192_v17 = vpop.f32.mrf.mxu3 }
 0x139   :  { %v179_v18 = vadd.f32 %v178_v16, %v84_v6  ;;  %v193_v19 = vadd.f32 %v192_v17, %v85_v7 }
 0x13b   :  { %201 = vst [vmem:[#allocation3 + $0x30] sm:$0xff] %v179_v18 }
 0x13c   :  { %202 = vst [vmem:[#allocation3 + $0x38] sm:$0xff] %v193_v19 }
 0x13d   :  { %215 = dma.vmem_to_hbm [thread:$0]  %s208_s20, 1024, %s210_s23, [#allocation4], %s308_s24, %s308_s24, %s309_s25  }
 0x13e   :  { %305 = dma.done.wait [#allocation4], 1024  }
 0x13f   :  { %306 = vsyncadd [#allocation4], 4294966272 }
 0x140   :  { %220 = vsyncpa [#allocation4], 1 }

</bundles_post_ra>
